<compile_context>
chip_gen: v7x
topology: tpu7x:2x2x1
jax: 0.10.0
libtpu: 0.0.40
codegen_flags: <defaults>
</compile_context>

<pallas_src>
import jax
import jax.numpy as jnp
from jax.experimental import pallas as pl
from jax.experimental.pallas import tpu as pltpu

IN_CH = 2      # Conv2d in_channels
OUT_CH = 1     # Conv2d out_channels
_LANE = 128


def _round_up(a, b):
    return (a + b - 1) // b * b


def _make_kernel(p, k):
    """p = spatial size per channel (4), k = flat group width per batch element (8)."""

    def kernel(x_ref, off_ref, w_ref, o_ref):
        # x_ref:   (TR, 128) uint8   flat NCHW input, group-of-k per batch element
        # off_ref: (1, 128)  f32     bias - t/255, tiled across lanes with period k
        # w_ref:   (2,)      f32     1x1-conv weights (SMEM scalars)
        # o_ref:   (TR, 128) f32     flat NCHW output
        xf = x_ref[...].astype(jnp.int32).astype(jnp.float32)   # widen u8 in-kernel
        lane = jax.lax.broadcasted_iota(jnp.int32, (1, _LANE), 1)
        is_lo = (lane % k) < p                      # first half of each group (c=0 / j=0 slots)
        x_m4 = pltpu.roll(xf, p, axis=1)            # lane l <- x[l - p]
        x_p4 = pltpu.roll(xf, _LANE - p, axis=1)    # lane l <- x[l + p]
        x_c0 = jnp.where(is_lo, xf, x_m4)           # channel-0 operand for this lane's output
        x_c1 = jnp.where(is_lo, x_p4, xf)           # channel-1 operand
        o_ref[...] = w_ref[0] * x_c0 + w_ref[1] * x_c1 + off_ref[...]

    return kernel


def model_forward(x, t, w, b, *, tile_rows=8192):
    """x: (N, 2, H, W) uint8, t: (T0, H, W) uint8, w: (2,) f32, b: (1,) f32 -> (N, T0, H, W) f32."""
    N, C, H, W = x.shape
    T0 = t.shape[0]
    P = H * W
    K = C * P                                   # flat group width (input == output here)
    assert C == IN_CH and t.shape == (T0, H, W)
    assert T0 * P == K and _LANE % K == 0       # layout trick needs equal in/out group widths

    # Hoisted per-lane constant: bias - t/255 (exact division for bit-fidelity with torch).
    off_k = b[0] - t.astype(jnp.float32).reshape(K) / jnp.float32(255.0)
    off_lane = jnp.tile(off_k, _LANE // K).reshape(1, _LANE)

    # Flat contiguous view (no transpose, no cast) + lane/tile padding.
    total = N * K
    rows = pl.cdiv(total, _LANE)
    if rows <= tile_rows:
        # one tile, or two so both v7x TensorCores get work on medium problems
        tile_r = _round_up(pl.cdiv(rows, 2), 32) if rows >= 64 else _round_up(rows, 32)
    else:
        tile_r = tile_rows                      # multiple of 32 -> clean native u8 tiles
    rows_pad = _round_up(rows, tile_r)

    x_flat = x.reshape(-1)
    pad = rows_pad * _LANE - total
    if pad:
        x_flat = jnp.pad(x_flat, (0, pad))
    x2d = x_flat.reshape(rows_pad, _LANE)

    grid = (rows_pad // tile_r,)
    out = pl.pallas_call(
        _make_kernel(P, K),
        out_shape=jax.ShapeDtypeStruct((rows_pad, _LANE), jnp.float32),
        grid=grid,
        in_specs=[
            pl.BlockSpec((tile_r, _LANE), lambda i: (i, 0)),    # u8 input tiles (pipelined)
            pl.BlockSpec((1, _LANE), lambda i: (0, 0)),         # tiny per-lane constant
            pl.BlockSpec(memory_space=pltpu.MemorySpace.SMEM),  # conv weights (scalars)
        ],
        out_specs=pl.BlockSpec((tile_r, _LANE), lambda i: (i, 0)),
        compiler_params=pltpu.CompilerParams(
            dimension_semantics=("parallel",)),                 # megacore / v7x 2 TCs
    )(x2d, off_lane, w)

    out_flat = out.reshape(-1)
    if pad:
        out_flat = out_flat[:total]
    return out_flat.reshape(N, T0, H, W)


def _reference(x, t, w, b):
    xf = x.astype(jnp.float32)
    v1 = jnp.einsum("nchw,c->nhw", xf, w) + b[0]
    return v1[:, None, :, :] - t.astype(jnp.float32) / 255.0


if __name__ == "__main__":
    key = jax.random.PRNGKey(0)
    kw, kb, kx = jax.random.split(key, 3)

    # Deterministic Conv2d(2, 1, 1) parameter init (uniform, Kaiming-style bound).
    fan_in = IN_CH * 1 * 1
    bound = 1.0 / (fan_in ** 0.5)
    w = jax.random.uniform(kw, (IN_CH,), jnp.float32, -bound, bound)   # weight[0, :, 0, 0]
    b = jax.random.uniform(kb, (OUT_CH,), jnp.float32, -bound, bound)

    # Fixed tensor t from the module (uint8); forces H = W = 2.
    t = jnp.array([[[0, 255], [0, 255]],
                   [[255, 0], [255, 0]]], dtype=jnp.uint8)

    # Module-native tiny batch plus an aligned and a multi-grid-step shape.
    for n in (2, 128, 2048):
        kx, sub = jax.random.split(kx)
        x = jax.random.randint(sub, (n, IN_CH, 2, 2), 0, 256).astype(jnp.uint8)
        out = jax.block_until_ready(model_forward(x, t, w, b))
        ref = _reference(x, t, w, b)
        assert out.shape == ref.shape and out.dtype == jnp.float32
        assert jnp.allclose(out, ref, atol=1e-4, rtol=1e-5), f"mismatch at N={n}"

    print("KERNEL_OK")
</pallas_src>

<mosaic_0001>
module attributes {stable_mosaic.version = 11 : i64} {
  func.func @kernel(%arg0: i32, %arg1: memref<32x128xi8, #tpu.memory_space<vmem>>, %arg2: memref<1x128xf32, #tpu.memory_space<vmem>>, %arg3: memref<2xf32, #tpu.memory_space<smem>>, %arg4: memref<32x128xf32, #tpu.memory_space<vmem>>) attributes {dimension_semantics = [#tpu.dimension_semantics<parallel>], iteration_bounds = array<i64: 1>, scalar_prefetch = 0 : i64, scratch_operands = 0 : i64, tpu.core_type = #tpu.core_type<tc>, window_params = [{transform_indices = @transform_0, window_bounds = array<i64: 32, 128>}, {pipeline_mode = #tpu.pipeline_mode<synchronous>, transform_indices = @transform_1, window_bounds = array<i64: 1, 128>}, {transform_indices = @transform_2, window_bounds = array<i64: 2>}, {transform_indices = @transform_3, window_bounds = array<i64: 32, 128>}]} {
    %c0 = arith.constant 0 : index
    %c0_0 = arith.constant 0 : index
    %0 = vector.load %arg1[%c0, %c0_0] : memref<32x128xi8, #tpu.memory_space<vmem>>, vector<32x128xi8>
    %1 = arith.extui %0 : vector<32x128xi8> to vector<32x128xi32>
    %2 = arith.sitofp %1 : vector<32x128xi32> to vector<32x128xf32>
    %3 = tpu.iota {dimensions = array<i32: 1>} : vector<1x128xi32>
    %c8_i32 = arith.constant 8 : i32
    %c0_i32 = arith.constant 0 : i32
    %4 = arith.cmpi eq, %c8_i32, %c0_i32 : i32
    %c1_i32 = arith.constant 1 : i32
    %5 = arith.select %4, %c1_i32, %c8_i32 : i32
    %6 = vector.broadcast %5 : i32 to vector<1x128xi32>
    %7 = arith.remsi %3, %6 : vector<1x128xi32>
    %c0_i32_1 = arith.constant 0 : i32
    %8 = vector.broadcast %c0_i32_1 : i32 to vector<1x128xi32>
    %9 = arith.cmpi ne, %7, %8 : vector<1x128xi32>
    %c0_i32_2 = arith.constant 0 : i32
    %10 = vector.broadcast %c0_i32_2 : i32 to vector<1x128xi32>
    %11 = arith.cmpi slt, %7, %10 : vector<1x128xi32>
    %c0_i32_3 = arith.constant 0 : i32
    %12 = arith.cmpi slt, %5, %c0_i32_3 : i32
    %13 = vector.broadcast %12 : i1 to vector<1x128xi1>
    %14 = vector.broadcast %13 : vector<1x128xi1> to vector<1x128xi1>
    %15 = arith.xori %11, %14 : vector<1x128xi1>
    %16 = arith.andi %15, %9 : vector<1x128xi1>
    %17 = vector.broadcast %5 : i32 to vector<1x128xi32>
    %18 = arith.addi %7, %17 : vector<1x128xi32>
    %19 = arith.select %16, %18, %7 : vector<1x128xi1>, vector<1x128xi32>
    %c4_i32 = arith.constant 4 : i32
    %20 = vector.broadcast %c4_i32 : i32 to vector<1x128xi32>
    %21 = arith.cmpi slt, %19, %20 : vector<1x128xi32>
    %c4_i32_4 = arith.constant 4 : i32
    %22 = tpu.dynamic_rotate %2 by %c4_i32_4 dim 1 : vector<32x128xf32>, i32 -> vector<32x128xf32>
    %c124_i32 = arith.constant 124 : i32
    %23 = tpu.dynamic_rotate %2 by %c124_i32 dim 1 : vector<32x128xf32>, i32 -> vector<32x128xf32>
    %24 = vector.shape_cast %21 : vector<1x128xi1> to vector<1x128xi1>
    %25 = vector.broadcast %24 : vector<1x128xi1> to vector<32x128xi1>
    %26 = arith.select %25, %2, %22 : vector<32x128xi1>, vector<32x128xf32>
    %27 = vector.shape_cast %21 : vector<1x128xi1> to vector<1x128xi1>
    %28 = vector.broadcast %27 : vector<1x128xi1> to vector<32x128xi1>
    %29 = arith.select %28, %23, %2 : vector<32x128xi1>, vector<32x128xf32>
    %c0_5 = arith.constant 0 : index
    %30 = memref.load %arg3[%c0_5] : memref<2xf32, #tpu.memory_space<smem>>
    %31 = vector.broadcast %30 : f32 to vector<32x128xf32>
    %32 = arith.mulf %31, %26 : vector<32x128xf32>
    %c1 = arith.constant 1 : index
    %33 = memref.load %arg3[%c1] : memref<2xf32, #tpu.memory_space<smem>>
    %34 = vector.broadcast %33 : f32 to vector<32x128xf32>
    %35 = arith.mulf %34, %29 : vector<32x128xf32>
    %36 = arith.addf %32, %35 : vector<32x128xf32>
    %c0_6 = arith.constant 0 : index
    %c0_7 = arith.constant 0 : index
    %37 = vector.load %arg2[%c0_6, %c0_7] : memref<1x128xf32, #tpu.memory_space<vmem>>, vector<1x128xf32>
    %38 = vector.broadcast %37 : vector<1x128xf32> to vector<32x128xf32>
    %39 = arith.addf %36, %38 : vector<32x128xf32>
    %c0_8 = arith.constant 0 : index
    %c0_9 = arith.constant 0 : index
    %40 = vector.load %arg4[%c0_8, %c0_9] : memref<32x128xf32, #tpu.memory_space<vmem>>, vector<32x128xf32>
    tpu.vector_store %arg4[%c0_8, %c0_9], %39 {strides = array<i32>} : memref<32x128xf32, #tpu.memory_space<vmem>>, vector<32x128xf32>,
    return
  }
  func.func @transform_0(%arg0: i32) -> (i32, i32) {
    %c0_i32 = arith.constant 0 : i32
    %c0_i32_0 = arith.constant 0 : i32
    return %arg0, %c0_i32 : i32, i32
  }
  func.func @transform_1(%arg0: i32) -> (i32, i32) {
    %c0_i32 = arith.constant 0 : i32
    %c0_i32_0 = arith.constant 0 : i32
    %c0_i32_1 = arith.constant 0 : i32
    return %c0_i32, %c0_i32_0 : i32, i32
  }
  func.func @transform_2(%arg0: i32) -> i32 {
    %c0_i32 = arith.constant 0 : i32
    %c0_i32_0 = arith.constant 0 : i32
    return %c0_i32 : i32
  }
  func.func @transform_3(%arg0: i32) -> (i32, i32) {
    %c0_i32 = arith.constant 0 : i32
    %c0_i32_0 = arith.constant 0 : i32
    return %arg0, %c0_i32 : i32, i32
  }
}

</mosaic_0001>

<bundles_post_ra>
// kernel: tpu_custom_call.1
= control target key start
LH: loop header
LB: loop body
LE: loop exit
PB: predicated region body
PF: predicated region fallthrough
CT: control target
= control target key end

     0   :  { %8 = vsyncpa [#allocation3], 0  ;;  %s291_s0 = inlined_call_operand.hbm [shape: u8[32,128], index: 0, kind: input, shape index: {}]   ;;  %s292_s1 = inlined_call_operand.vmem [shape: f32[1,128], index: 1, kind: input, shape index: {}]   ;;  %s293_s2 = inlined_call_operand.vmem [shape: f32[2], index: 2, kind: input, shape index: {}]   ;;  %s294_s3 = inlined_call_operand.hbm [shape: f32[32,128], index: 3, kind: output, shape index: {}]  }
   0x1   :  { %9 = vsyncpa [#allocation5], 0 }
   0x2   :  { %10 = vsyncpa [#allocation4], 0  ;;  %s29_s14 = sshll.u32 %s293_s2, 4  ;;  %s214_s15 = smov [#allocation2]   ;;  %s30_s14 = int_to_ptr.vmem [resolvable:$true] %s29_s14 }
   0x3   :  { %s17_s16 = sshll.u32 %s214_s15, 4  ;;  %s152_s19 = scalar_lea.hbm %s291_s0, 128  ;;  %s18_s16 = int_to_ptr.vmem [resolvable:$true] %s17_s16 }
   0x4   :  { %p153_p0 = scmp.ne.s32.totalorder %s291_s0, %s152_s19  ;;  %p156_p1 = scmp.lt.u32.totalorder %s152_s19, %s291_s0 }
   0x6   :  { %p158_p2 = pnand %p156_p1, %p153_p0 }
   0x8   :  { %161 = shalt.err (!%p158_p2)
}
   0x9   :  { %s162_s24 = scalar_lea.vmem %s18_s16, 128  ;;  %p167_p4 = scmp.lt.s32.totalorder %s18_s16, %s18_s16 }
   0xa   :  { %p163_p3 = scmp.ne.s32.totalorder %s18_s16, %s162_s24  ;;  %p168_p5 = scmp.lt.s32.totalorder %s162_s24, %s162_s24 }
   0xc   :  { %p169_p6 = por %p168_p5, %p167_p4 }
   0xe   :  { %p170_p7 = pnand %p169_p6, %p163_p3 }
  0x10   :  { %173 = shalt.err (!%p170_p7)
}
  0x11   :  { %20 = dma.hbm_to_vmem [thread:$0]  %s291_s0, 128, %s18_s16, [#allocation3]  }
  0x12   :  { %s174_s26 = scalar_lea.vmem %s30_s14, 16  ;;  %p179_p9 = scmp.lt.s32.totalorder %s30_s14, %s30_s14 }
  0x13   :  { %p175_p8 = scmp.ne.s32.totalorder %s30_s14, %s174_s26  ;;  %p180_p10 = scmp.lt.s32.totalorder %s174_s26, %s174_s26 }
  0x15   :  { %p181_p11 = por %p180_p10, %p179_p9 }
  0x17   :  { %p182_p12 = pnand %p181_p11, %p175_p8 }
  0x19   :  { %185 = shalt.err (!%p182_p12)
}
  0x1a   :  { %s215_s27 = smov [#allocation6]  }
  0x1b   :  { %32 = dma.vmem_to_smem %s30_s14, 16, %s215_s27, [#allocation5]  }
  0x1c   :  { %208 = dma.done.wait [#allocation3], 128  }
  0x1d   :  { %209 = vsyncadd [#allocation3], 4294967168 }
  0x1e   :  { %210 = dma.done.wait [#allocation5], 16  }
  0x1f   :  { %211 = vsyncadd [#allocation5], 4294967280 }
  0x20   :  { %39 = sfence }
  0x21   :  { %v40_v0 = vld [vmem:[#allocation2] sm:$0xff]  ;;  %s216_s0 = smov 4   ;;  %s217_s28 = smov 124   ;;  %v53_v13 = vlaneseq }
  0x22   :  { %v43_v1 = vunpack.c.2.s8 %v40_v0  ;;  %v41_v2 = vunpack.c.0.s8 %v40_v0  ;;  %v44_v3 = vunpack.c.3.s8 %v40_v0  ;;  %v42_v4 = vunpack.c.1.s8 %v40_v0  ;;  %s94_s29 = sld [smem:[#allocation6]]  ;;  %s143_s30 = sld [smem:[#allocation6 + $0x1]]  ;;  %v144_v35 = vld [vmem:[%s292_s1] ss:$0 sm:$0xff] }
  0x23   :  { %v54_v14 = vand.u32 127, %v53_v13  ;;  %s218_s6 = smov [#allocation7]  }
  0x24   :  { %v47_v5 = vand.u32 255, %v43_v1  ;;  %v45_v6 = vand.u32 255, %v41_v2  ;;  %v48_v7 = vand.u32 255, %v44_v3  ;;  %v46_v8 = vand.u32 255, %v42_v4  ;;  %s130_s7 = sshll.u32 %s218_s6, 4  ;;  %s131_s7 = int_to_ptr.vmem [resolvable:$true] %s130_s7 }
  0x25   :  { %v59_v15 = vand.u32 7, %v54_v14  ;;  %s186_s1 = scalar_lea.vmem %s131_s7, 512  ;;  %p191_p0 = scmp.lt.s32.totalorder %s131_s7, %s131_s7 }
  0x26   :  { %v51_v9 = vcvt.s32.f32 %v47_v5  ;;  %v49_v10 = vcvt.s32.f32 %v45_v6  ;;  %v52_v11 = vcvt.s32.f32 %v48_v7  ;;  %v50_v12 = vcvt.s32.f32 %v46_v8  ;;  %p187_p13 = scmp.ne.s32.totalorder %s131_s7, %s186_s1  ;;  %p192_p1 = scmp.lt.s32.totalorder %s186_s1, %s186_s1 }
  0x27   :  { %vm256_vm0 = vcmp.lt.s32.totalorder %v59_v15, 4 }
  0x28   :  { %72 = vrot.lane.b32.xlu1 %v51_v9, %s216_s0  ;;  %68 = vrot.lane.b32.xlu0 %v49_v10, %s216_s0  ;;  %v95_v21 = vstv %s94_s29  ;;  %v101_v24 = vstv %s143_s30  ;;  %p193_p2 = por %p192_p1, %p191_p0 }
  0x2a   :  { %p194_p3 = pnand %p193_p2, %p187_p13 }
  0x2c   :  { %74 = vrot.lane.b32.xlu1 %v52_v11, %s216_s0  ;;  %70 = vrot.lane.b32.xlu0 %v50_v12, %s216_s0 }
  0x30   :  { %78 = vrot.lane.b32.xlu1 %v50_v12, %s217_s28  ;;  %76 = vrot.lane.b32.xlu0 %v49_v10, %s217_s28 }
  0x34   :  { %82 = vrot.lane.b32.xlu1 %v52_v11, %s217_s28  ;;  %80 = vrot.lane.b32.xlu0 %v51_v9, %s217_s28 }
  0x9a   :  { %v73_v16 = vpop.permute.xlu1 %72  ;;  %v69_v17 = vpop.permute.xlu0 %68 }
  0x9b   :  { %v86_v22 = vsel %vm256_vm0, %v49_v10, %v69_v17  ;;  %v88_v27 = vsel %vm256_vm0, %v51_v9, %v73_v16 }
  0x9c   :  { %v96_v28 = vmul.f32 %v95_v21, %v86_v22  ;;  %v98_v40 = vmul.f32 %v95_v21, %v88_v27 }
  0x9e   :  { %v75_v19 = vpop.permute.xlu1 %74  ;;  %v71_v20 = vpop.permute.xlu0 %70 }
  0x9f   :  { %v87_v23 = vsel %vm256_vm0, %v50_v12, %v71_v20  ;;  %v89_v31 = vsel %vm256_vm0, %v52_v11, %v75_v19 }
  0xa0   :  { %v97_v32 = vmul.f32 %v95_v21, %v87_v23  ;;  %v99_v41 = vmul.f32 %v95_v21, %v89_v31 }
  0xa2   :  { %v79_v25 = vpop.permute.xlu1 %78  ;;  %v77_v26 = vpop.permute.xlu0 %76 }
  0xa3   :  { %v91_v29 = vsel %vm256_vm0, %v79_v25, %v50_v12  ;;  %v90_v30 = vsel %vm256_vm0, %v77_v26, %v49_v10 }
  0xa4   :  { %v103_v33 = vmul.f32 %v101_v24, %v91_v29  ;;  %v102_v34 = vmul.f32 %v101_v24, %v90_v30 }
  0xa6   :  { %v107_v36 = vadd.f32 %v103_v33, %v97_v32  ;;  %v106_v37 = vadd.f32 %v102_v34, %v96_v28  ;;  %v83_v38 = vpop.permute.xlu1 %82  ;;  %v81_v39 = vpop.permute.xlu0 %80 }
  0xa7   :  { %v93_v42 = vsel %vm256_vm0, %v83_v38, %v52_v11  ;;  %v92_v43 = vsel %vm256_vm0, %v81_v39, %v51_v9 }
  0xa8   :  { %v118_v44 = vadd.f32 %v144_v35, %v107_v36  ;;  %v117_v45 = vadd.f32 %v144_v35, %v106_v37  ;;  %v105_v46 = vmul.f32 %v101_v24, %v93_v42  ;;  %v104_v47 = vmul.f32 %v101_v24, %v92_v43 }
  0xaa   :  { %122 = vst [vmem:[#allocation7 + $0x8] sm:$0xff] %v118_v44  ;;  %121 = vst [vmem:[#allocation7] sm:$0xff] %v117_v45  ;;  %v109_v48 = vadd.f32 %v105_v46, %v99_v41  ;;  %v108_v49 = vadd.f32 %v104_v47, %v98_v40 }
  0xac   :  { %v120_v50 = vadd.f32 %v144_v35, %v109_v48  ;;  %v119_v51 = vadd.f32 %v144_v35, %v108_v49 }
  0xae   :  { %124 = vst [vmem:[#allocation7 + $0x18] sm:$0xff] %v120_v50  ;;  %123 = vst [vmem:[#allocation7 + $0x10] sm:$0xff] %v119_v51 }
  0xaf   :  { %197 = shalt.err (!%p194_p3)
}
  0xb0   :  { %s198_s10 = scalar_lea.hbm %s294_s3, 512 }
  0xb1   :  { %p199_p4 = scmp.ne.s32.totalorder %s294_s3, %s198_s10  ;;  %p202_p5 = scmp.lt.u32.totalorder %s198_s10, %s294_s3 }
  0xb3   :  { %p204_p6 = pnand %p202_p5, %p199_p4 }
  0xb5   :  { %207 = shalt.err (!%p204_p6)
}
  0xb6   :  { %s219_s15 = smov 128   ;;  %s220_s16 = smov 8  }
  0xb7   :  { %136 = dma.vmem_to_hbm [thread:$0]  %s131_s7, 512, %s294_s3, [#allocation4], %s219_s15, %s219_s15, %s220_s16  }
  0xb8   :  { %212 = dma.done.wait [#allocation4], 512  }
  0xb9   :  { %213 = vsyncadd [#allocation4], 4294966784 }
  0xba   :  { %140 = vsyncpa [#allocation3], 1 }
  0xbb   :  { %141 = vsyncpa [#allocation4], 1 }
  0xbc   :  { %142 = vsyncpa [#allocation5], 1 }

</bundles_post_ra>
